<compile_context>
chip_gen: v7x
topology: tpu7x:2x2x1
jax: 0.10.0
libtpu: 0.0.40
codegen_flags: <defaults>
</compile_context>

<pallas_src>
import jax
import jax.numpy as jnp
from jax.experimental import pallas as pl
from jax.experimental.pallas import tpu as pltpu


def _round_up(x, m):
    return ((x + m - 1) // m) * m


def _tpu_vmem_physical_bytes():
    """Best-effort physical VMEM size for the attached TPU generation."""
    try:
        kind = jax.devices()[0].device_kind.lower()
    except Exception:
        kind = ""
    if "v7" in kind or "7x" in kind:
        return 64 * 1024 * 1024
    if any(t in kind for t in ("v4", "v5", "v6")):
        return 128 * 1024 * 1024
    return 64 * 1024 * 1024  # unknown -> conservative


def _gcn_spmm_kernel(scale_ref, adj_ref, emb_ref, out_ref, *scratch):
    """One (row-block i, K-block k) step of out = diag(scale) @ adj_mask @ embeds."""
    acc_ref = scratch[0] if scratch else out_ref  # f32 out: accumulate in place
    k = pl.program_id(1)
    nk = pl.num_programs(1)
    tk = adj_ref.shape[1]

    # adj block is an int8 0/1 mask (exact path) or bf16 values (fallback);
    # feed the MXU in bf16 either way (the upcast is VPU work, free on a
    # DMA-bound kernel).
    adj_blk = adj_ref[...].astype(jnp.bfloat16)

    if emb_ref.shape[0] == tk:
        # Streamed (tk, D) block, or resident embeds with a single K tile.
        emb_blk = emb_ref[...]
    else:
        # Embeds fully resident in VMEM: slice out this K tile.
        start = pl.multiple_of(k * tk, 128)
        emb_blk = emb_ref[pl.ds(start, tk), :]

    prod = jnp.dot(adj_blk, emb_blk, preferred_element_type=jnp.float32)

    @pl.when(k == 0)
    def _():
        acc_ref[...] = prod

    @pl.when(k > 0)
    def _():
        acc_ref[...] += prod

    # Apply the per-row f32 scale (1/deg for a normalized adjacency; exact 1.0
    # on the fallback path) and write out on the last K step.
    @pl.when(k == nk - 1)
    def _():
        out_ref[...] = (acc_ref[...] * scale_ref[...]).astype(out_ref.dtype)


def prepare_adj(adj):
    """One-time, cacheable preprocessing of the dense (normalized) adjacency.

    Returns a dict to pass to gcn_layer_apply(); reuse it across GCN layers
    and training steps so the O(M*K) pad / factorize passes are paid once.
    """
    adj = jnp.asarray(adj)
    assert adj.ndim == 2
    M, K = adj.shape

    # ---- tile selection ---------------------------------------------------
    # tm: large row blocks, but keep grid_m >= 2 so both v7x TensorCores get
    # work on the 'parallel' M axis.
    if M >= 1024:
        tm = 512
    elif M >= 512:
        tm = 256
    elif M > 128:
        tm = 128
    else:
        tm = _round_up(max(M, 8), 32)  # int8 operands pack 32 rows per tile
    M_pad = _round_up(M, tm)

    # tk: large K tiles amortize the ~0.35us per-grid-step overhead and give
    # long contiguous DMA runs; a (512, 4096) int8 tile is only 2 MiB/buffer.
    tk = min(4096, _round_up(K, 256))
    K_pad = _round_up(K, tk)

    # ---- exact factorization: adj == diag(row_scale) @ binary_mask ? -------
    adj_f32 = adj.astype(jnp.float32)
    row_scale = jnp.max(adj_f32, axis=1, keepdims=True)  # (M, 1)
    factored = bool(jnp.all((adj_f32 == 0.0) | (adj_f32 == row_scale)))

    if factored:
        # 1-byte exact mask stream + per-row f32 scale (no quantization error).
        mask = (adj_f32 != 0.0).astype(jnp.int8)
        adj_p = jnp.pad(mask, ((0, M_pad - M), (0, K_pad - K)))
        scale = jnp.pad(row_scale, ((0, M_pad - M), (0, 0))).astype(jnp.float32)
    else:
        # Fallback for general adjacencies: bf16 value stream, unit scale.
        adj_p = jnp.pad(adj_f32, ((0, M_pad - M), (0, K_pad - K))).astype(jnp.bfloat16)
        scale = jnp.ones((M_pad, 1), jnp.float32)

    return dict(M=M, K=K, M_pad=M_pad, K_pad=K_pad, tm=tm, tk=tk,
                factored=factored, adj_p=adj_p, scale=scale)


def gcn_layer_apply(prep, embeds):
    """Pallas GCNLayer.forward(adj, embeds, flag=True) using cached prep."""
    M, K = prep["M"], prep["K"]
    M_pad, K_pad = prep["M_pad"], prep["K_pad"]
    tm, tk = prep["tm"], prep["tk"]
    adj_p, scale = prep["adj_p"], prep["scale"]

    K2, D = embeds.shape
    assert K2 == K, "adj columns must match embeds rows"

    grid_m = M_pad // tm
    grid_k = K_pad // tk

    out_dtype = embeds.dtype
    out_itemsize = jnp.dtype(out_dtype).itemsize
    adj_itemsize = jnp.dtype(adj_p.dtype).itemsize

    # Embeds stream is small next to adj; bf16 feeds the MXU natively.
    emb_p = jnp.pad(embeds, ((0, K_pad - K), (0, 0))).astype(jnp.bfloat16)

    # ---- VMEM budget / embeds residency ------------------------------------
    phys_vmem = _tpu_vmem_physical_bytes()
    budget = phys_vmem * 3 // 4  # headroom for compiler scratch / pipelining

    # f32 outputs accumulate directly into the resident output block.
    use_scratch = out_dtype != jnp.float32

    fixed_vmem = (2 * tm * tk * adj_itemsize          # adj double buffer
                  + 2 * tm * D * out_itemsize          # output double buffer
                  + (tm * D * 4 if use_scratch else 0)  # f32 accumulator
                  + 2 * tm * 4)                        # per-row scale buffers
    emb_resident_alloc = 2 * K_pad * D * 2  # conservatively assume 2 buffers
    embeds_resident = fixed_vmem + emb_resident_alloc <= budget

    if embeds_resident:
        # Constant block index -> DMA'd once, kept resident for the whole grid.
        emb_spec = pl.BlockSpec((K_pad, D), lambda i, k: (0, 0))
        emb_alloc = emb_resident_alloc
    else:
        emb_spec = pl.BlockSpec((tk, D), lambda i, k: (k, 0))
        emb_alloc = 2 * tk * D * 2

    vmem_est = fixed_vmem + emb_alloc
    vmem_limit = int(min(phys_vmem * 15 // 16,
                         max(32 * 1024 * 1024, vmem_est * 5 // 4)))

    cost = pl.CostEstimate(
        flops=2 * M_pad * K_pad * D,
        transcendentals=0,
        bytes_accessed=(adj_p.size * adj_itemsize
                        + emb_p.size * 2
                        + M_pad * D * out_itemsize
                        + M_pad * 4),
    )

    scratch_shapes = (pltpu.VMEM((tm, D), jnp.float32),) if use_scratch else ()

    out = pl.pallas_call(
        _gcn_spmm_kernel,
        out_shape=jax.ShapeDtypeStruct((M_pad, D), out_dtype),
        grid_spec=pltpu.PrefetchScalarGridSpec(
            num_scalar_prefetch=0,
            grid=(grid_m, grid_k),
            in_specs=[
                pl.BlockSpec((tm, 1), lambda i, k: (i, 0)),    # per-row f32 scale
                pl.BlockSpec((tm, tk), lambda i, k: (i, k)),   # int8 mask / bf16 adj
                emb_spec,                                      # embeds
            ],
            out_specs=pl.BlockSpec((tm, D), lambda i, k: (i, 0)),
            scratch_shapes=scratch_shapes,
        ),
        compiler_params=pltpu.CompilerParams(
            dimension_semantics=("parallel", "arbitrary"),
            vmem_limit_bytes=vmem_limit,
        ),
        cost_estimate=cost,
    )(scale, adj_p, emb_p)

    return out[:M]


def gcn_layer(adj, embeds):
    """One-shot convenience wrapper (prefer caching prepare_adj across layers)."""
    return gcn_layer_apply(prepare_adj(adj), embeds)


if __name__ == "__main__":
    key = jax.random.PRNGKey(0)
    k_adj, k_emb = jax.random.split(key)

    n_nodes = 256   # number of graph nodes
    d_hidden = 128  # embedding dim

    # Deterministic synthetic normalized adjacency (dense representation of the
    # sparse graph) and node embeddings.
    raw = jax.random.uniform(k_adj, (n_nodes, n_nodes), dtype=jnp.float32)
    adj_bin = (raw > 0.9).astype(jnp.float32)                     # sparse-ish mask
    adj_bin = jnp.minimum(adj_bin + jnp.eye(n_nodes, dtype=jnp.float32), 1.0)
    deg = jnp.sum(adj_bin, axis=1, keepdims=True)
    adj_norm = adj_bin / jnp.maximum(deg, 1.0)                    # row-normalize

    embeds = jax.random.normal(k_emb, (n_nodes, d_hidden), dtype=jnp.float32)

    # One-time adjacency preprocessing, reused across GCN layers / steps.
    prep = prepare_adj(adj_norm)
    assert prep["factored"], "expected exact int8-mask + row-scale factorization"

    # Layer 1: f32 embeds -> direct accumulation into the f32 output block.
    out = jax.block_until_ready(gcn_layer_apply(prep, embeds))
    ref = adj_norm @ embeds
    assert out.shape == (n_nodes, d_hidden)
    assert jnp.allclose(out, ref, atol=2e-2, rtol=2e-2), float(
        jnp.max(jnp.abs(out - ref)))

    # Layer 2 reuses the cached preprocessing; bf16 embeds exercise the
    # f32-scratch accumulator path.
    out2 = jax.block_until_ready(gcn_layer_apply(prep, out.astype(jnp.bfloat16)))
    ref2 = adj_norm @ ref
    assert jnp.allclose(out2.astype(jnp.float32), ref2, atol=5e-2, rtol=5e-2), float(
        jnp.max(jnp.abs(out2.astype(jnp.float32) - ref2)))

    print("KERNEL_OK")
</pallas_src>

<mosaic_0001>
module attributes {stable_mosaic.version = 11 : i64} {
  func.func @_gcn_spmm_kernel(%arg0: i32, %arg1: i32, %arg2: memref<128x1xf32, #tpu.memory_space<vmem>>, %arg3: memref<128x256xi8, #tpu.memory_space<vmem>>, %arg4: memref<256x128xbf16, #tpu.memory_space<vmem>>, %arg5: memref<128x128xf32, #tpu.memory_space<vmem>>) attributes {dimension_semantics = [#tpu.dimension_semantics<parallel>, #tpu.dimension_semantics<arbitrary>], iteration_bounds = array<i64: 2, 1>, scalar_prefetch = 0 : i64, scratch_operands = 0 : i64, tpu.core_type = #tpu.core_type<tc>, window_params = [{transform_indices = @transform_0, window_bounds = array<i64: 128, 1>}, {transform_indices = @transform_1, window_bounds = array<i64: 128, 256>}, {pipeline_mode = #tpu.pipeline_mode<synchronous>, transform_indices = @transform_2, window_bounds = array<i64: 256, 128>}, {transform_indices = @transform_3, window_bounds = array<i64: 128, 128>}]} {
    %c0 = arith.constant 0 : index
    %c0_0 = arith.constant 0 : index
    %0 = vector.load %arg3[%c0, %c0_0] : memref<128x256xi8, #tpu.memory_space<vmem>>, vector<128x256xi8>
    %1 = arith.sitofp %0 : vector<128x256xi8> to vector<128x256xbf16>
    %c0_1 = arith.constant 0 : index
    %c0_2 = arith.constant 0 : index
    %2 = vector.load %arg4[%c0_1, %c0_2] : memref<256x128xbf16, #tpu.memory_space<vmem>>, vector<256x128xbf16>
    %cst = arith.constant dense<0.000000e+00> : vector<128x128xf32>
    %3 = tpu.matmul %1, %2, %cst {dimension_numbers = #tpu.dot_dimension_numbers<[1], [0], [0], [1], [0, 0, 1, 1], [], []>} : vector<128x256xbf16>, vector<256x128xbf16>, vector<128x128xf32> -> vector<128x128xf32>
    %c0_i32 = arith.constant 0 : i32
    %4 = arith.cmpi eq, %arg1, %c0_i32 : i32
    %5 = arith.extui %4 : i1 to i32
    %c0_i32_3 = arith.constant 0 : i32
    %6 = arith.cmpi ne, %5, %c0_i32_3 : i32
    scf.if %6 {
      %c0_8 = arith.constant 0 : index
      %c0_9 = arith.constant 0 : index
      %13 = vector.load %arg5[%c0_8, %c0_9] : memref<128x128xf32, #tpu.memory_space<vmem>>, vector<128x128xf32>
      tpu.vector_store %arg5[%c0_8, %c0_9], %3 {strides = array<i32>} : memref<128x128xf32, #tpu.memory_space<vmem>>, vector<128x128xf32>,
    } else {
    }
    %c0_i32_4 = arith.constant 0 : i32
    %7 = arith.cmpi sgt, %arg1, %c0_i32_4 : i32
    %8 = arith.extui %7 : i1 to i32
    %c0_i32_5 = arith.constant 0 : i32
    %9 = arith.cmpi ne, %8, %c0_i32_5 : i32
    scf.if %9 {
      %c0_8 = arith.constant 0 : index
      %c0_9 = arith.constant 0 : index
      %13 = vector.load %arg5[%c0_8, %c0_9] : memref<128x128xf32, #tpu.memory_space<vmem>>, vector<128x128xf32>
      %14 = arith.addf %13, %3 : vector<128x128xf32>
      %c0_10 = arith.constant 0 : index
      %c0_11 = arith.constant 0 : index
      %15 = vector.load %arg5[%c0_10, %c0_11] : memref<128x128xf32, #tpu.memory_space<vmem>>, vector<128x128xf32>
      tpu.vector_store %arg5[%c0_10, %c0_11], %14 {strides = array<i32>} : memref<128x128xf32, #tpu.memory_space<vmem>>, vector<128x128xf32>,
    } else {
    }
    %c0_i32_6 = arith.constant 0 : i32
    %10 = arith.cmpi eq, %arg1, %c0_i32_6 : i32
    %11 = arith.extui %10 : i1 to i32
    %c0_i32_7 = arith.constant 0 : i32
    %12 = arith.cmpi ne, %11, %c0_i32_7 : i32
    scf.if %12 {
      %c0_8 = arith.constant 0 : index
      %c0_9 = arith.constant 0 : index
      %13 = vector.load %arg5[%c0_8, %c0_9] : memref<128x128xf32, #tpu.memory_space<vmem>>, vector<128x128xf32>
      %c0_10 = arith.constant 0 : index
      %c0_11 = arith.constant 0 : index
      %14 = vector.load %arg2[%c0_10, %c0_11] : memref<128x1xf32, #tpu.memory_space<vmem>>, vector<128x1xf32>
      %15 = vector.broadcast %14 : vector<128x1xf32> to vector<128x128xf32>
      %16 = arith.mulf %13, %15 : vector<128x128xf32>
      %c0_12 = arith.constant 0 : index
      %c0_13 = arith.constant 0 : index
      %17 = vector.load %arg5[%c0_12, %c0_13] : memref<128x128xf32, #tpu.memory_space<vmem>>, vector<128x128xf32>
      tpu.vector_store %arg5[%c0_12, %c0_13], %16 {strides = array<i32>} : memref<128x128xf32, #tpu.memory_space<vmem>>, vector<128x128xf32>,
    } else {
    }
    return
  }
  func.func @transform_0(%arg0: i32, %arg1: i32) -> (i32, i32) {
    %c0_i32 = arith.constant 0 : i32
    %c0_i32_0 = arith.constant 0 : i32
    return %arg0, %c0_i32 : i32, i32
  }
  func.func @transform_1(%arg0: i32, %arg1: i32) -> (i32, i32) {
    %c0_i32 = arith.constant 0 : i32
    return %arg0, %arg1 : i32, i32
  }
  func.func @transform_2(%arg0: i32, %arg1: i32) -> (i32, i32) {
    %c0_i32 = arith.constant 0 : i32
    %c0_i32_0 = arith.constant 0 : i32
    %c0_i32_1 = arith.constant 0 : i32
    return %c0_i32, %c0_i32_0 : i32, i32
  }
  func.func @transform_3(%arg0: i32, %arg1: i32) -> (i32, i32) {
    %c0_i32 = arith.constant 0 : i32
    %c0_i32_0 = arith.constant 0 : i32
    return %arg0, %c0_i32 : i32, i32
  }
}

</mosaic_0001>

<bundles_post_ra>
// kernel: tpu_custom_call.1
= control target key start
LH: loop header
LB: loop body
LE: loop exit
PB: predicated region body
PF: predicated region fallthrough
CT: control target
= control target key end

     0   :  { %8 = vsyncpa [#allocation3], 0  ;;  %s1316_s0 = inlined_call_operand.vmem [shape: f32[256,1], index: 0, kind: input, shape index: {}]   ;;  %s1317_s1 = inlined_call_operand.vmem [shape: s8[256,256], index: 1, kind: input, shape index: {}]   ;;  %s1318_s2 = inlined_call_operand.vmem [shape: bf16[256,128], index: 2, kind: input, shape index: {}]   ;;  %s1319_s3 = inlined_call_operand.hbm [shape: f32[256,128], index: 3, kind: output, shape index: {}]  }
   0x1   :  { %10 = vsyncpa [#allocation3 + $0x1], 0  ;;  %s1090_s12 = smov 0   ;;  %s1092_s13 = smov 0  }
   0x2   :  { %s1094_s14 = smov 0   ;;  %s1096_s15 = smov 0  }
   0x3   :  { %s1098_s16 = smov 0   ;;  %s1100_s17 = smov 0  }
   0x4 LB: > { %s796_s18 = sadd.s32 4294967295, %s1064_s17   ;;  %s797_s19 = sadd.s32 4294967294, %s1064_s17   ;;  %s1064_s17 = sphi %s1100_s17, %s16_s17   ;;  %s1060_s16 = sphi %s1098_s16, %s1326_s16   ;;  %s1056_s15 = sphi %s1096_s15, %s1325_s15   ;;  %s1052_s14 = sphi %s1094_s14, %s1324_s14   ;;  %s1048_s13 = sphi %s1092_s13, %s1323_s13   ;;  %s1044_s12 = sphi %s1090_s12, %s1322_s12  }
   0x5   : > { %s28_s20 = sadd.s32 1, %s1060_s16  ;;  %s110_s21 = sadd.s32 1, %s1052_s14 }
   0x6   : > { %p30_p0 = scmp.ge.s32.totalorder %s28_s20, 2  ;;  %p120_p1 = scmp.ne.s32.totalorder %s1052_s14, %s1048_s13 }
   0x7   : > { %p121_p2 = scmp.eq.s32.totalorder %s796_s18, 1  ;;  %p126_p3 = scmp.ne.s32.totalorder %s1048_s13, %s1044_s12 }
   0x8   : > { %s1328_s20 = smov (%p30_p0, %s28_s20), 0  ;;  %p127_p5 = scmp.eq.s32.totalorder %s797_s19, 1 }
   0x9   : > { %p1130_p4 = por %p121_p2, %p120_p1  ;;  %s107_s23 = ssub.s32 %s1060_s16, %s1328_s20 }
   0xa   : > { %p800_p6 = scmp.ge.s32.totalorder %s1064_s17, 1  ;;  %p108_p7 = scmp.eq.s32.totalorder %s107_s23, 0 }
   0xb   : > { %p1137_p8 = por %p127_p5, %p126_p3  ;;  %p172_p9 = scmp.lt.s32.totalorder %s1064_s17, 3 }
   0xc   : > { %s1143_s25 = scalar_select %p108_p7, %s1052_s14, %s110_s21  }
   0xd   : > { %p173_p10 = pnand %p800_p6, %p172_p9 }
   0xe   : > { %v970_v0 = vld [vmem:[%s1318_s2 + $0x40] sm:$0xff] (!%p173_p10)   ;;  %s804_s28 = sshll.u32 (!%p173_p10), %s1056_s15, 2  ;;  %v972_v2 = vld [vmem:[%s1318_s2 + $0x48] sm:$0xff] (!%p173_p10)   ;;  %v974_v4 = vld [vmem:[%s1318_s2 + $0x50] sm:$0xff] (!%p173_p10)   ;;  %s802_s10 = sshll.u32 (!%p173_p10), %s1056_s15, 4  ;;  %v1066_v5 = vmov (!%p173_p10), 0  }
   0xf   : > { %176 = sbr.rel (%p173_p10) target bundleno = 305 (0x131), region = 32  ;;  %v971_v1 = vld [vmem:[%s1318_s2] sm:$0xff] (!%p173_p10)   ;;  %p214_p11 = scmp.lt.s32.totalorder (!%p173_p10), %s804_s28, 7  ;;  %830 = vmatprep.subr.bf16.mxu0 (!%p173_p10), %v970_v0  ;;  %894 = vmatprep.subr.bf16.mxu1 (!%p173_p10), %v970_v0  ;;  %v973_v3 = vld [vmem:[%s1318_s2 + $0x8] sm:$0xff] (!%p173_p10)   ;;  %v975_v6 = vld [vmem:[%s1318_s2 + $0x10] sm:$0xff] (!%p173_p10)  }
  0x10   : > { %831 = vmatpush3.bf16.msra.mxu0 (!%p173_p10), %v971_v1  ;;  %902 = vmatpush3.bf16.msra.mxu1 (!%p173_p10), %v971_v1  ;;  %p207_p12 = scmp.lt.s32.totalorder (!%p173_p10), %s802_s10, 31  ;;  %v976_v7 = vld [vmem:[%s1318_s2 + $0x58] sm:$0xff] (!%p173_p10)   ;;  %v978_v9 = vld [vmem:[%s1318_s2 + $0x60] sm:$0xff] (!%p173_p10)   ;;  %v980_v11 = vld [vmem:[%s1318_s2 + $0x68] sm:$0xff] (!%p173_p10)   ;;  %s829_s11 = sshll.u32 (!%p173_p10), %s1056_s15, 11 }
  0x11   : > { %832 = vmatprep.subr.bf16.mxu0 (!%p173_p10), %v972_v2  ;;  %895 = vmatprep.subr.bf16.mxu1 (!%p173_p10), %v972_v2  ;;  %v977_v8 = vld [vmem:[%s1318_s2 + $0x18] sm:$0xff] (!%p173_p10)   ;;  %v979_v10 = vld [vmem:[%s1318_s2 + $0x20] sm:$0xff] (!%p173_p10)   ;;  %v981_v16 = vld [vmem:[%s1318_s2 + $0x28] sm:$0xff] (!%p173_p10)   ;;  %s1067_s26 = smov (!%p173_p10), [#allocation2]  }
  0x12   : > { %969 = vset.pattern.permute.xlu1 (!%p173_p10), %v1066_v5  ;;  %968 = vset.pattern.permute.xlu0 (!%p173_p10), %v1066_v5  ;;  %v982_v19 = vld [vmem:[%s1318_s2 + $0x70] sm:$0xff] (!%p173_p10)   ;;  %v984_v23 = vld [vmem:[%s1318_s2 + $0x78] sm:$0xff] (!%p173_p10)   ;;  %s990_s27 = sshll.u32 (!%p173_p10), %s1067_s26, 4  ;;  %s991_s27 = int_to_ptr.vmem [resolvable:$false] %s990_s27 }
  0x13   : > { %v983_v20 = vld [vmem:[%s1318_s2 + $0x30] sm:$0xff] (!%p173_p10)   ;;  %v985_v24 = vld [vmem:[%s1318_s2 + $0x38] sm:$0xff] (!%p173_p10)   ;;  %s992_s29 = scalar_lea.vmem (!%p173_p10), %s991_s27, 4096 }
  0x14   : > { %833 = vmatpush3.bf16.msra.mxu0 (!%p173_p10), %v973_v3  ;;  %903 = vmatpush3.bf16.msra.mxu1 (!%p173_p10), %v973_v3 }
  0x15   : > { %834 = vmatprep.subr.bf16.mxu0 (!%p173_p10), %v974_v4  ;;  %896 = vmatprep.subr.bf16.mxu1 (!%p173_p10), %v974_v4 }
  0x16   : > { %s1330_s28 = smov (!%p214_p11, %s804_s28), 7  ;;  %s1332_s10 = smov (!%p207_p12, %s802_s10), 31 }
  0x17   : > { %s828_s23 = sshll.u32 %s1330_s28, 4  ;;  %s803_s28 = sshll.u32 %s1332_s10, 3 }
  0x18   : > { %835 = vmatpush3.bf16.msra.mxu0 %v975_v6  ;;  %904 = vmatpush3.bf16.msra.mxu1 %v975_v6  ;;  %s1177_s6 = scalar_lea.vmem %s1317_s1, %s828_s23  ;;  %s1190_s21 = scalar_lea.vmem %s1316_s0, %s803_s28 }
  0x19   : > { %836 = vmatprep.subr.bf16.mxu0 %v976_v7  ;;  %897 = vmatprep.subr.bf16.mxu1 %v976_v7  ;;  %v227_v12 = vld [vmem:[%s1177_s6 + $0x8] sm:$0xff]  ;;  %v568_v17 = vld [vmem:[%s1190_s21 + $0x10] sm:$0xff]  ;;  %v566_v18 = vld [vmem:[%s1190_s21] sm:$0xff]  ;;  %s1259_s10 = scalar_lea.hbm %s1319_s3, %s829_s11 }
  0x1a   : > { %v231_v13 = vld [vmem:[%s1177_s6 + $0x28] sm:$0xff]  ;;  %v235_v14 = vunpack.c.l.s8.bf16 %v227_v12  ;;  %594 = vperm.xlu1 %969, %v568_v17   ;;  %584 = vperm.xlu0 %968, %v566_v18   ;;  %v569_v21 = vld [vmem:[%s1190_s21 + $0x18] sm:$0xff]  ;;  %v226_v25 = vld [vmem:[%s1177_s6] sm:$0xff]  ;;  %v237_v31 = vunpack.c.h.s8.bf16 %v227_v12 }
  0x1b   : > { %v243_v15 = vunpack.c.l.s8.bf16 %v231_v13  ;;  %v567_v22 = vld [vmem:[%s1190_s21 + $0x8] sm:$0xff]  ;;  %v230_v26 = vld [vmem:[%s1177_s6 + $0x20] sm:$0xff]  ;;  %v234_v29 = vunpack.c.l.s8.bf16 %v226_v25  ;;  %v245_v32 = vunpack.c.h.s8.bf16 %v231_v13  ;;  %v573_v33 = vld [vmem:[%s1190_s21 + $0x38] sm:$0xff]  ;;  %v236_v39 = vunpack.c.h.s8.bf16 %v226_v25 }
  0x1c   : > { %837 = vmatpush3.bf16.msra.mxu0 %v977_v8  ;;  %905 = vmatpush3.bf16.msra.mxu1 %v977_v8  ;;  %v571_v27 = vld [vmem:[%s1190_s21 + $0x28] sm:$0xff]  ;;  %v570_v28 = vld [vmem:[%s1190_s21 + $0x20] sm:$0xff]  ;;  %v242_v30 = vunpack.c.l.s8.bf16 %v230_v26  ;;  %v572_v34 = vld [vmem:[%s1190_s21 + $0x30] sm:$0xff]  ;;  %v244_v40 = vunpack.c.h.s8.bf16 %v230_v26 }
  0x1d   : > { %838 = vmatprep.subr.bf16.mxu0 %v978_v9  ;;  %898 = vmatprep.subr.bf16.mxu1 %v978_v9  ;;  %v229_v35 = vld [vmem:[%s1177_s6 + $0x18] sm:$0xff]  ;;  %v575_v37 = vld [vmem:[%s1190_s21 + $0x48] sm:$0xff]  ;;  %v574_v38 = vld [vmem:[%s1190_s21 + $0x40] sm:$0xff] }
  0x1e   : > { %410 = vmatprep.mubr.bf16.mxu0 %v235_v14  ;;  %442 = vmatprep.mubr.bf16.mxu1 %v243_v15  ;;  %v233_v36 = vld [vmem:[%s1177_s6 + $0x38] sm:$0xff]  ;;  %v239_v41 = vunpack.c.l.s8.bf16 %v229_v35  ;;  %v576_v44 = vld [vmem:[%s1190_s21 + $0x50] sm:$0xff]  ;;  %v579_v47 = vld [vmem:[%s1190_s21 + $0x68] sm:$0xff]  ;;  %v241_v51 = vunpack.c.h.s8.bf16 %v229_v35 }
  0x1f   : > { %599 = vperm.xlu1 %969, %v569_v21   ;;  %589 = vperm.xlu0 %968, %v567_v22   ;;  %v247_v42 = vunpack.c.l.s8.bf16 %v233_v36  ;;  %v577_v43 = vld [vmem:[%s1190_s21 + $0x58] sm:$0xff]  ;;  %v228_v45 = vld [vmem:[%s1177_s6 + $0x10] sm:$0xff]  ;;  %v578_v48 = vld [vmem:[%s1190_s21 + $0x60] sm:$0xff]  ;;  %v249_v52 = vunpack.c.h.s8.bf16 %v233_v36 }
  0x20   : > { %839 = vmatpush3.bf16.msra.mxu0 %v979_v10  ;;  %906 = vmatpush3.bf16.msra.mxu1 %v979_v10  ;;  %v232_v46 = vld [vmem:[%s1177_s6 + $0x30] sm:$0xff]  ;;  %v238_v49 = vunpack.c.l.s8.bf16 %v228_v45  ;;  %v581_v53 = vld [vmem:[%s1190_s21 + $0x78] sm:$0xff]  ;;  %v240_v55 = vunpack.c.h.s8.bf16 %v228_v45  ;;  %s203_s6 = sand.u32 1, %s1048_s13  }
  0x21   : > { %840 = vmatprep.subr.bf16.mxu0 %v980_v11  ;;  %899 = vmatprep.subr.bf16.mxu1 %v980_v11  ;;  %v246_v50 = vunpack.c.l.s8.bf16 %v232_v46  ;;  %v580_v54 = vld [vmem:[%s1190_s21 + $0x70] sm:$0xff]  ;;  %v248_v56 = vunpack.c.h.s8.bf16 %v232_v46  ;;  %s801_s8 = sshll.u32 %s203_s6, 7  ;;  %s1270_s15 = scalar_lea.sflag [#allocation3], %s203_s6 }
  0x22   : > { %s1238_s9 = scalar_lea.vmem [#allocation2], %s801_s8 }
  0x23   : > { %609 = vperm.xlu1 %969, %v571_v27   ;;  %604 = vperm.xlu0 %968, %v570_v28   ;;  %s708_s18 = sshll.u32 %s1238_s9, 4  ;;  %s1261_s18 = int_to_ptr.vmem [resolvable:$true] %s708_s18 }
  0x24   : > { %841 = vmatpush3.bf16.msra.mxu0 %v981_v16  ;;  %907 = vmatpush3.bf16.msra.mxu1 %v981_v16  ;;  %s986_s23 = scalar_lea.vmem %s1261_s18, 2048  ;;  %p993_p2 = scmp.lt.s32.totalorder %s1261_s18, %s991_s27 }
  0x25   : > { %842 = vmatprep.subr.bf16.mxu0 %v982_v19  ;;  %900 = vmatprep.subr.bf16.mxu1 %v982_v19  ;;  %p987_p13 = scmp.ne.s32.totalorder %s1261_s18, %s986_s23  ;;  %p994_p3 = scmp.lt.s32.totalorder %s992_s29, %s986_s23 }
  0x27   : > { %619 = vperm.xlu1 %969, %v573_v33   ;;  %614 = vperm.xlu0 %968, %v572_v34   ;;  %p988_p0 = pnand %p987_p13, %p1130_p4  ;;  %p995_p5 = por %p994_p3, %p993_p2 }
  0x28   : > { %843 = vmatpush3.bf16.msra.mxu0 %v983_v20  ;;  %908 = vmatpush3.bf16.msra.mxu1 %v983_v20 }
  0x29   : > { %844 = vmatprep.subr.bf16.mxu0 %v984_v23  ;;  %901 = vmatprep.subr.bf16.mxu1 %v984_v23  ;;  %p989_p1 = pneg %p988_p0 }
  0x2b   : > { %629 = vperm.xlu1 %969, %v575_v37   ;;  %624 = vperm.xlu0 %968, %v574_v38   ;;  %p996_p6 = pnand %p995_p5, %p989_p1 }
  0x2c   : > { %845 = vmatpush3.bf16.msra.mxu0 %v985_v24  ;;  %909 = vmatpush3.bf16.msra.mxu1 %v985_v24 }
  0x2f   : > { %411 = vmatmul.mubr.bf16.vlgmr.msra.gmra.mrb[0].mxu0 %v234_v29  ;;  %443 = vmatmul.mubr.bf16.vlgmr.msra.gmra.mrb[0].mxu1 %v242_v30 }
  0x30   : > { %418 = vmatprep.mubr.bf16.mxu0 %v237_v31  ;;  %450 = vmatprep.mubr.bf16.mxu1 %v245_v32 }
  0x31   : > { %639 = vperm.xlu1 %969, %v577_v43   ;;  %634 = vperm.xlu0 %968, %v576_v44  }
  0x35   : > { %649 = vperm.xlu1 %969, %v579_v47   ;;  %644 = vperm.xlu0 %968, %v578_v48  }
  0x37   : > { %419 = vmatmul.mubr.bf16.gmra.mrb[4].mxu0 %v236_v39  ;;  %451 = vmatmul.mubr.bf16.gmra.mrb[4].mxu1 %v244_v40 }
  0x38   : > { %426 = vmatprep.mubr.bf16.mxu0 %v239_v41  ;;  %458 = vmatprep.mubr.bf16.mxu1 %v247_v42 }
  0x39   : > { %659 = vperm.xlu1 %969, %v581_v53   ;;  %654 = vperm.xlu0 %968, %v580_v54  }
  0x3f   : > { %427 = vmatmul.mubr.bf16.gmra.mrb[8].mxu0 %v238_v49  ;;  %459 = vmatmul.mubr.bf16.gmra.mrb[8].mxu1 %v246_v50 }
  0x40   : > { %434 = vmatprep.mubr.bf16.mxu0 %v241_v51  ;;  %466 = vmatprep.mubr.bf16.mxu1 %v249_v52 }
  0x47   : > { %435 = vmatmul.mubr.bf16.gmra.mrb[12].mxu0 %v240_v55  ;;  %467 = vmatmul.mubr.bf16.gmra.mrb[12].mxu1 %v248_v56 }
  0x99   : > { %v585_v57 = vpop.permute.xlu0 %584  ;;  %v595_v58 = vpop.permute.xlu1 %594 }
  0x9e   : > { %v590_v59 = vpop.permute.xlu0 %589  ;;  %v600_v60 = vpop.permute.xlu1 %599 }
  0xa2   : > { %v605_v61 = vpop.permute.xlu0 %604  ;;  %v1229_v62 = vpop.permute.xlu1 %609 }
  0xa6   : > { %v1231_v63 = vpop.permute.xlu0 %614  ;;  %v1234_v0 = vpop.permute.xlu1 %619 }
  0xaa   : > { %v625_v1 = vpop.permute.xlu0 %624  ;;  %v630_v16 = vpop.permute.xlu1 %629 }
  0xb0   : > { %v635_v19 = vpop.permute.xlu0 %634  ;;  %v640_v34 = vpop.permute.xlu1 %639 }
  0xb4   : > { %v645_v37 = vpop.permute.xlu0 %644  ;;  %v650_v52 = vpop.permute.xlu1 %649 }
  0xb8   : > { %v655_v55 = vpop.permute.xlu0 %654 }
 0x102   : > { %v846_v2 = vpop.f32.mrb[0].mxu0  ;;  %v870_v3 = vpop.f32.mrb[0].mxu1 }
 0x103   : > { %v847_v4 = vpop.f32.mrb[1].mxu0  ;;  %v871_v5 = vpop.f32.mrb[1].mxu1 }
 0x104   : > { %v848_v6 = vadd.f32 %v847_v4, %v846_v2  ;;  %v872_v7 = vadd.f32 %v871_v5, %v870_v3  ;;  %v849_v8 = vpop.f32.mrb[2].mxu0  ;;  %v873_v9 = vpop.f32.mrb[2].mxu1 }
 0x105   : > { %v850_v10 = vpop.f32.mrb[3].mxu0  ;;  %v874_v11 = vpop.f32.mrb[3].mxu1 }
 0x106   : > { %v662_v12 = vmul.f32 %v848_v6, %v585_v57  ;;  %v670_v13 = vmul.f32 %v872_v7, %v625_v1  ;;  %v851_v14 = vadd.f32 %v850_v10, %v849_v8  ;;  %v875_v15 = vadd.f32 %v874_v11, %v873_v9  ;;  %v660_v8 = vpop.permute.xlu1 %659 }
 0x108   : > { %678 = vst [vmem:[%s1238_s9] sm:$0xff] %v662_v12  ;;  %686 = vst [vmem:[%s1238_s9 + $0x40] sm:$0xff] %v670_v13  ;;  %v663_v17 = vmul.f32 %v851_v14, %v590_v59  ;;  %v671_v18 = vmul.f32 %v875_v15, %v630_v16 }
 0x10a   : > { %679 = vst [vmem:[%s1238_s9 + $0x8] sm:$0xff] %v663_v17  ;;  %687 = vst [vmem:[%s1238_s9 + $0x48] sm:$0xff] %v671_v18  ;;  %v852_v20 = vpop.f32.mrb[4].mxu0  ;;  %v876_v21 = vpop.f32.mrb[4].mxu1 }
 0x10b   : > { %v853_v22 = vpop.f32.mrb[5].mxu0  ;;  %v877_v23 = vpop.f32.mrb[5].mxu1 }
 0x10c   : > { %v854_v24 = vadd.f32 %v853_v22, %v852_v20  ;;  %v878_v25 = vadd.f32 %v877_v23, %v876_v21  ;;  %v855_v26 = vpop.f32.mrb[6].mxu0  ;;  %v879_v27 = vpop.f32.mrb[6].mxu1 }
 0x10d   : > { %v856_v28 = vpop.f32.mrb[7].mxu0  ;;  %v880_v29 = vpop.f32.mrb[7].mxu1 }
 0x10e   : > { %v664_v30 = vmul.f32 %v854_v24, %v595_v58  ;;  %v672_v31 = vmul.f32 %v878_v25, %v635_v19  ;;  %v857_v32 = vadd.f32 %v856_v28, %v855_v26  ;;  %v881_v33 = vadd.f32 %v880_v29, %v879_v27 }
 0x110   : > { %680 = vst [vmem:[%s1238_s9 + $0x10] sm:$0xff] %v664_v30  ;;  %688 = vst [vmem:[%s1238_s9 + $0x50] sm:$0xff] %v672_v31  ;;  %v665_v35 = vmul.f32 %v857_v32, %v600_v60  ;;  %v673_v36 = vmul.f32 %v881_v33, %v640_v34 }
 0x112   : > { %681 = vst [vmem:[%s1238_s9 + $0x18] sm:$0xff] %v665_v35  ;;  %689 = vst [vmem:[%s1238_s9 + $0x58] sm:$0xff] %v673_v36  ;;  %v858_v38 = vpop.f32.mrb[8].mxu0  ;;  %v882_v39 = vpop.f32.mrb[8].mxu1 }
 0x113   : > { %v859_v40 = vpop.f32.mrb[9].mxu0  ;;  %v883_v41 = vpop.f32.mrb[9].mxu1 }
 0x114   : > { %v860_v42 = vadd.f32 %v859_v40, %v858_v38  ;;  %v884_v43 = vadd.f32 %v883_v41, %v882_v39  ;;  %v861_v44 = vpop.f32.mrb[10].mxu0  ;;  %v885_v45 = vpop.f32.mrb[10].mxu1 }
 0x115   : > { %v862_v46 = vpop.f32.mrb[11].mxu0  ;;  %v886_v47 = vpop.f32.mrb[11].mxu1 }
 0x116   : > { %v666_v48 = vmul.f32 %v860_v42, %v605_v61  ;;  %v674_v49 = vmul.f32 %v884_v43, %v645_v37  ;;  %v863_v50 = vadd.f32 %v862_v46, %v861_v44  ;;  %v887_v51 = vadd.f32 %v886_v47, %v885_v45 }
 0x118   : > { %682 = vst [vmem:[%s1238_s9 + $0x20] sm:$0xff] %v666_v48  ;;  %690 = vst [vmem:[%s1238_s9 + $0x60] sm:$0xff] %v674_v49  ;;  %v667_v53 = vmul.f32 %v863_v50, %v1229_v62  ;;  %v675_v54 = vmul.f32 %v887_v51, %v650_v52 }
 0x11a   : > { %683 = vst [vmem:[%s1238_s9 + $0x28] sm:$0xff] %v667_v53  ;;  %691 = vst [vmem:[%s1238_s9 + $0x68] sm:$0xff] %v675_v54  ;;  %v864_v56 = vpop.f32.mrb[12].mxu0  ;;  %v888_v57 = vpop.f32.mrb[12].mxu1 }
 0x11b   : > { %v865_v58 = vpop.f32.mrb[13].mxu0  ;;  %v889_v59 = vpop.f32.mrb[13].mxu1 }
 0x11c   : > { %v866_v60 = vadd.f32 %v865_v58, %v864_v56  ;;  %v890_v61 = vadd.f32 %v889_v59, %v888_v57  ;;  %v867_v1 = vpop.f32.mrb[14].mxu0  ;;  %v891_v2 = vpop.f32.mrb[14].mxu1 }
 0x11d   : > { %v868_v62 = vpop.f32.mrb[15].mxu0  ;;  %v892_v3 = vpop.f32.mrb[15].mxu1 }
 0x11e   : > { %v668_v4 = vmul.f32 %v866_v60, %v1231_v63  ;;  %v676_v5 = vmul.f32 %v890_v61, %v655_v55  ;;  %v869_v6 = vadd.f32 %v868_v62, %v867_v1  ;;  %v893_v7 = vadd.f32 %v892_v3, %v891_v2 }
 0x120   : > { %684 = vst [vmem:[%s1238_s9 + $0x30] sm:$0xff] %v668_v4  ;;  %692 = vst [vmem:[%s1238_s9 + $0x70] sm:$0xff] %v676_v5  ;;  %v669_v9 = vmul.f32 %v869_v6, %v1234_v0  ;;  %v677_v63 = vmul.f32 %v893_v7, %v660_v8 }
 0x122   : > { %685 = vst [vmem:[%s1238_s9 + $0x38] sm:$0xff] %v669_v9  ;;  %693 = vst [vmem:[%s1238_s9 + $0x78] sm:$0xff] %v677_v63 }
 0x123   : > { %999 = shalt.err (!%p996_p6)
}
 0x124   : > { %s1000_s30 = scalar_lea.hbm %s1259_s10, 2048  ;;  %s1004_s28 = scalar_lea.hbm %s1319_s3, 4096 }
 0x125   : > { %p1001_p7 = scmp.ne.s32.totalorder %s1259_s10, %s1000_s30  ;;  %p1005_p11 = scmp.lt.u32.totalorder %s1259_s10, %s1319_s3 }
 0x126   : > { %p1006_p12 = scmp.lt.u32.totalorder %s1004_s28, %s1000_s30  ;;  %p1008_p0 = scmp.lt.u32.totalorder %s1000_s30, %s1259_s10 }
 0x127   : > { %p1002_p9 = pnand %p1001_p7, %p1130_p4 }
 0x128   : > { %p1007_p13 = por %p1006_p12, %p1005_p11 }
 0x129   : > { %p1003_p10 = pneg %p1002_p9 }
 0x12a   : > { %p1009_p1 = por %p1008_p0, %p1007_p13 }
 0x12c   : > { %p1010_p2 = pnand %p1009_p1, %p1003_p10 }
 0x12e   : > { %1013 = shalt.err (!%p1010_p2)
}
 0x12f   : > { %s1068_s8 = smov 128   ;;  %s1069_s9 = smov 8  }
 0x130   : > { %910 = dma.vmem_to_hbm [thread:$0]  (%p1130_p4), %s1261_s18, 2048, %s1259_s10, %s1270_s15, %s1068_s8, %s1068_s8, %s1069_s9  }
 0x131 PF: > { %p916_p3 = scmp.ge.s32.totalorder %s1064_s17, 2  ;;  %s723_s11 = sand.u32 1, %s1044_s12  }
 0x132   : > { %s724_s19 = scalar_lea.sflag [#allocation3], %s723_s11 }
 0x133   : > { %p913_p5 = pnand %p916_p3, %p1137_p8 }
 0x135   : > { %1039 = dma.done.wait (!%p913_p5), %s724_s19, 2048  }
 0x136   : > { %1041 = vsyncadd (!%p913_p5), %s724_s19, 4294965248  ;;  %s16_s17 = sadd.s32 1, %s1064_s17   ;;  %s1322_s12 = smov %s1048_s13 }
 0x137   : > { %p13_p6 = scmp.ge.s32.totalorder %s16_s17, 4   ;;  %s1323_s13 = smov %s1052_s14 }
 0x138   : > { %s1324_s14 = smov %s1143_s25  ;;  %s1325_s15 = smov %s1060_s16 }
 0x139   : > { %s1326_s16 = smov %s1328_s20  ;;  %15 = sbr.rel (!%p13_p6) target bundleno = 4 (0x4), region = 82 }
 0x140   :  { %729 = vsyncpa [#allocation3], 1 }
 0x141   :  { %731 = vsyncpa [#allocation3 + $0x1], 1 }

</bundles_post_ra>
